<compile_context>
chip_gen: v6e
topology: v6e:2x2x1
jax: 0.10.0
libtpu: 0.0.40
codegen_flags: <defaults>
</compile_context>

<pallas_src>
import functools

import jax
import jax.numpy as jnp
from jax import lax
from jax.experimental import pallas as pl
from jax.experimental.pallas import tpu as pltpu

_SUB, _LANE = 8, 128              # vreg tile
_MAX_TR = 512                     # multiple of 32 (int8/bool sublane packing)
_TILE_BYTE_BUDGET = 28 << 20      # double-buffered stream footprint target
_VMEM_LIMIT = 40 << 20            # safe on v5e/v6e (128 MiB) and v7x (64 MiB/TC)


def _round_up(x, m):
    return ((x + m - 1) // m) * m


def _round_down(x, m):
    return (x // m) * m


def _elementwise_loss(score, target, margin):
    if target.dtype == jnp.bool_:
        is_pos = target
    else:
        is_pos = target == 1
    return jnp.where(is_pos, 1.0 - score, jnp.maximum(score - margin, 0.0))


def _choose_tiles(R, C, bytes_per_elem):
    """Pick (TR, TC).  Prefer full rows; keep the grid >= 2 cells when possible."""
    TR = R if R <= _MAX_TR else _MAX_TR
    if TR * C * bytes_per_elem <= _TILE_BYTE_BUDGET:
        TC = C                                    # full-row contiguous DMA
    else:
        TC = _round_down(_TILE_BYTE_BUDGET // (TR * bytes_per_elem), _LANE)
        TC = max(_LANE, TC)
    # Keep >= 2 grid cells so v7x's second TensorCore has work.
    if pl.cdiv(R, TR) * pl.cdiv(C, TC) == 1:
        cand_r = _round_up(pl.cdiv(R, 2), 32)
        if cand_r < R:
            TR = cand_r
        else:
            cand_c = _round_up(pl.cdiv(C, 2), _LANE)
            if cand_c < C:
                TC = cand_c
    return TR, TC


# ---------------- reduction='none': elementwise loss only ----------------

def _hinge_none_kernel(margin_ref, score_ref, target_ref, loss_ref):
    s = score_ref[...]
    t = target_ref[...]
    m = margin_ref[0]
    loss_ref[...] = _elementwise_loss(s, t, m).astype(loss_ref.dtype)


def _call_none(score, target, margin, out_dtype):
    R, C = score.shape
    tb = jnp.dtype(target.dtype).itemsize
    ob = jnp.dtype(out_dtype).itemsize
    TR, TC = _choose_tiles(R, C, 2 * (4 + tb + ob))
    gi, gj = pl.cdiv(R, TR), pl.cdiv(C, TC)
    margin_arr = jnp.full((1,), margin, jnp.float32)
    cost = pl.CostEstimate(flops=4 * R * C, transcendentals=0,
                           bytes_accessed=R * C * (4 + tb + ob))
    return pl.pallas_call(
        _hinge_none_kernel,
        out_shape=jax.ShapeDtypeStruct((R, C), out_dtype),
        grid_spec=pltpu.PrefetchScalarGridSpec(
            num_scalar_prefetch=0,
            grid=(gi, gj),
            in_specs=[
                pl.BlockSpec(memory_space=pltpu.MemorySpace.SMEM),  # margin
                pl.BlockSpec((TR, TC), lambda i, j: (i, j)),        # score
                pl.BlockSpec((TR, TC), lambda i, j: (i, j)),        # target
            ],
            out_specs=pl.BlockSpec((TR, TC), lambda i, j: (i, j)),
        ),
        compiler_params=pltpu.CompilerParams(
            dimension_semantics=("parallel", "parallel"),
            vmem_limit_bytes=_VMEM_LIMIT),
        cost_estimate=cost,
    )(margin_arr, score, target)


# -------------- reduction='sum'/'mean': per-tile partial sums --------------

def _hinge_psum_kernel(margin_ref, score_ref, target_ref, psum_ref, *,
                       R, C, TR, TC, mask_rows, mask_cols):
    s = score_ref[...]
    t = target_ref[...]
    m = margin_ref[0]
    loss = _elementwise_loss(s, t, m)

    # Mask out-of-bounds padding of ragged tail tiles (trace-time gated; with
    # TC == C the column branch never exists).
    if mask_rows or mask_cols:
        valid = None
        if mask_rows:
            row = lax.broadcasted_iota(jnp.int32, loss.shape, 0) + pl.program_id(0) * TR
            valid = row < R
        if mask_cols:
            col = lax.broadcasted_iota(jnp.int32, loss.shape, 1) + pl.program_id(1) * TC
            cvalid = col < C
            valid = cvalid if valid is None else (valid & cvalid)
        loss = jnp.where(valid, loss, 0.0)

    # Single unmasked (8,128) store per tile: scalar sum placed at [0,0].
    total = jnp.sum(loss)
    rid = lax.broadcasted_iota(jnp.int32, (_SUB, _LANE), 0)
    cid = lax.broadcasted_iota(jnp.int32, (_SUB, _LANE), 1)
    psum_ref[...] = jnp.where((rid == 0) & (cid == 0), total, jnp.float32(0.0))


def _call_sum(score, target, margin):
    R, C = score.shape
    tb = jnp.dtype(target.dtype).itemsize
    TR, TC = _choose_tiles(R, C, 2 * (4 + tb))
    gi, gj = pl.cdiv(R, TR), pl.cdiv(C, TC)
    margin_arr = jnp.full((1,), margin, jnp.float32)
    kernel = functools.partial(
        _hinge_psum_kernel, R=R, C=C, TR=TR, TC=TC,
        mask_rows=(R % TR != 0), mask_cols=(C % TC != 0))
    cost = pl.CostEstimate(flops=4 * R * C + R * C, transcendentals=0,
                           bytes_accessed=R * C * (4 + tb) + gi * gj * _SUB * _LANE * 4)
    partials = pl.pallas_call(
        kernel,
        out_shape=jax.ShapeDtypeStruct((gi * _SUB, gj * _LANE), jnp.float32),
        grid_spec=pltpu.PrefetchScalarGridSpec(
            num_scalar_prefetch=0,
            grid=(gi, gj),
            in_specs=[
                pl.BlockSpec(memory_space=pltpu.MemorySpace.SMEM),  # margin
                pl.BlockSpec((TR, TC), lambda i, j: (i, j)),        # score
                pl.BlockSpec((TR, TC), lambda i, j: (i, j)),        # target
            ],
            out_specs=pl.BlockSpec((_SUB, _LANE), lambda i, j: (i, j)),
        ),
        compiler_params=pltpu.CompilerParams(
            dimension_semantics=("parallel", "parallel"),
            vmem_limit_bytes=_VMEM_LIMIT),
        cost_estimate=cost,
    )(margin_arr, score, target)
    return jnp.sum(partials)


# ------------------------------ public API ------------------------------

def pairwise_hinge_loss(score, target, margin=0.0, reduction="mean",
                        min_kernel_elems=1 << 18, out_dtype=None):
    """PairwiseHingeLoss.forward.  score: f32[R,C]; target: int/bool (1 = positive)."""
    if reduction not in ("none", "mean", "sum"):
        raise ValueError(f"Invalid reduction mode: {reduction}")
    score = jnp.asarray(score, jnp.float32)
    target = jnp.asarray(target)          # read in native dtype inside the kernel
    out_dtype = jnp.float32 if out_dtype is None else jnp.dtype(out_dtype)

    # Tiny / non-2D / shape-mismatched inputs: XLA's fused where/max/sum is
    # already optimal, and kernel launch overhead would dominate.
    if (score.ndim != 2 or target.shape != score.shape
            or score.size < min_kernel_elems):
        loss = _elementwise_loss(score, target, jnp.float32(margin))
        if reduction == "none":
            return loss.astype(out_dtype)
        return loss.mean() if reduction == "mean" else loss.sum()

    if reduction == "none":
        return _call_none(score, target, margin, out_dtype)

    total = _call_sum(score, target, margin)
    if reduction == "mean":
        return total / jnp.float32(score.size)
    return total


if __name__ == "__main__":
    key = jax.random.PRNGKey(0)
    k1, k2, k3, k4 = jax.random.split(key, 4)

    # Small vreg-aligned shape, forced through the kernel path (int32 target).
    R0, C0 = 8, 128
    s0 = jax.random.normal(k1, (R0, C0), dtype=jnp.float32)
    t0 = jax.random.bernoulli(k2, 0.5, (R0, C0)).astype(jnp.int32)

    out_none = jax.block_until_ready(
        pairwise_hinge_loss(s0, t0, margin=0.0, reduction="none", min_kernel_elems=0))
    out_sum = jax.block_until_ready(
        pairwise_hinge_loss(s0, t0, margin=0.0, reduction="sum", min_kernel_elems=0))
    out_mean = jax.block_until_ready(
        pairwise_hinge_loss(s0, t0, margin=0.0, reduction="mean", min_kernel_elems=0))

    ref0 = jnp.where(t0 == 1, 1.0 - s0, jnp.maximum(s0 - 0.0, 0.0))
    assert jnp.allclose(out_none, ref0, atol=1e-6)
    assert jnp.allclose(out_sum, ref0.sum(), rtol=1e-5, atol=1e-4)
    assert jnp.allclose(out_mean, ref0.mean(), rtol=1e-5, atol=1e-6)

    # Ragged multi-tile shape with int8 target: exercises full-row tiles,
    # row-split for the 2-cell grid, tail masking, nonzero margin, and the
    # size-based dispatch (360K elems -> kernel path).
    R1, C1 = 300, 1200
    margin = 0.25
    s1 = jax.random.normal(k3, (R1, C1), dtype=jnp.float32)
    t1 = jax.random.bernoulli(k4, 0.5, (R1, C1)).astype(jnp.int8)

    out1_none = jax.block_until_ready(
        pairwise_hinge_loss(s1, t1, margin=margin, reduction="none"))
    out1_sum = jax.block_until_ready(
        pairwise_hinge_loss(s1, t1, margin=margin, reduction="sum"))
    out1_mean = jax.block_until_ready(
        pairwise_hinge_loss(s1, t1, margin=margin, reduction="mean"))

    ref1 = jnp.where(t1 == 1, 1.0 - s1, jnp.maximum(s1 - margin, 0.0))
    assert jnp.allclose(out1_none, ref1, atol=1e-6)
    assert jnp.allclose(out1_sum, ref1.sum(), rtol=1e-4, atol=1e-2)
    assert jnp.allclose(out1_mean, ref1.mean(), rtol=1e-4, atol=1e-6)

    print("KERNEL_OK")
</pallas_src>

<mosaic_0001>
module attributes {stable_mosaic.version = 11 : i64} {
  func.func @_hinge_none_kernel(%arg0: i32, %arg1: i32, %arg2: memref<1xf32, #tpu.memory_space<smem>>, %arg3: memref<8x128xf32, #tpu.memory_space<vmem>>, %arg4: memref<8x128xi32, #tpu.memory_space<vmem>>, %arg5: memref<8x128xf32, #tpu.memory_space<vmem>>) attributes {dimension_semantics = [#tpu.dimension_semantics<parallel>, #tpu.dimension_semantics<parallel>], iteration_bounds = array<i64: 1, 1>, scalar_prefetch = 0 : i64, scratch_operands = 0 : i64, tpu.core_type = #tpu.core_type<tc>, window_params = [{transform_indices = @transform_0, window_bounds = array<i64: 1>}, {transform_indices = @transform_1, window_bounds = array<i64: 8, 128>}, {transform_indices = @transform_2, window_bounds = array<i64: 8, 128>}, {transform_indices = @transform_3, window_bounds = array<i64: 8, 128>}]} {
    %c0 = arith.constant 0 : index
    %c0_0 = arith.constant 0 : index
    %0 = vector.load %arg3[%c0, %c0_0] : memref<8x128xf32, #tpu.memory_space<vmem>>, vector<8x128xf32>
    %c0_1 = arith.constant 0 : index
    %c0_2 = arith.constant 0 : index
    %1 = vector.load %arg4[%c0_1, %c0_2] : memref<8x128xi32, #tpu.memory_space<vmem>>, vector<8x128xi32>
    %c0_3 = arith.constant 0 : index
    %2 = memref.load %arg2[%c0_3] : memref<1xf32, #tpu.memory_space<smem>>
    %c1_i32 = arith.constant 1 : i32
    %3 = vector.broadcast %c1_i32 : i32 to vector<8x128xi32>
    %4 = arith.cmpi eq, %1, %3 : vector<8x128xi32>
    %cst = arith.constant 1.000000e+00 : f32
    %5 = vector.broadcast %cst : f32 to vector<8x128xf32>
    %6 = arith.subf %5, %0 : vector<8x128xf32>
    %7 = vector.broadcast %2 : f32 to vector<8x128xf32>
    %8 = arith.subf %0, %7 : vector<8x128xf32>
    %cst_4 = arith.constant 0.000000e+00 : f32
    %9 = vector.broadcast %cst_4 : f32 to vector<8x128xf32>
    %10 = arith.maximumf %8, %9 : vector<8x128xf32>
    %11 = arith.select %4, %6, %10 : vector<8x128xi1>, vector<8x128xf32>
    %c0_5 = arith.constant 0 : index
    %c0_6 = arith.constant 0 : index
    %12 = vector.load %arg5[%c0_5, %c0_6] : memref<8x128xf32, #tpu.memory_space<vmem>>, vector<8x128xf32>
    tpu.vector_store %arg5[%c0_5, %c0_6], %11 {strides = array<i32>} : memref<8x128xf32, #tpu.memory_space<vmem>>, vector<8x128xf32>,
    return
  }
  func.func @transform_0(%arg0: i32, %arg1: i32) -> i32 {
    %c0_i32 = arith.constant 0 : i32
    %c0_i32_0 = arith.constant 0 : i32
    return %c0_i32 : i32
  }
  func.func @transform_1(%arg0: i32, %arg1: i32) -> (i32, i32) {
    %c0_i32 = arith.constant 0 : i32
    return %arg0, %arg1 : i32, i32
  }
  func.func @transform_2(%arg0: i32, %arg1: i32) -> (i32, i32) {
    %c0_i32 = arith.constant 0 : i32
    return %arg0, %arg1 : i32, i32
  }
  func.func @transform_3(%arg0: i32, %arg1: i32) -> (i32, i32) {
    %c0_i32 = arith.constant 0 : i32
    return %arg0, %arg1 : i32, i32
  }
}

</mosaic_0001>

<bundles_post_ra>
// kernel: tpu_custom_call.1
= control target key start
LH: loop header
LB: loop body
LE: loop exit
PB: predicated region body
PF: predicated region fallthrough
CT: control target
= control target key end

     0   :  { %9 = vsyncpa [#allocation4], 0  ;;  %s170_s0 = inlined_call_operand.<no memory space> [shape: f32[1], index: 0, kind: input, shape index: {}]   ;;  %s171_s1 = inlined_call_operand.hbm [shape: f32[8,128], index: 1, kind: input, shape index: {}]   ;;  %s172_s2 = inlined_call_operand.hbm [shape: s32[8,128], index: 2, kind: input, shape index: {}]   ;;  %s173_s3 = inlined_call_operand.hbm [shape: f32[8,128], index: 3, kind: output, shape index: {}]  }
   0x1   :  { %10 = vsyncpa [#allocation7], 0 }
   0x2   :  { %11 = vsyncpa [#allocation5], 0  ;;  %s135_s12 = smov [#allocation3]   ;;  %s136_s14 = smov [#allocation6]  }
   0x3   :  { %s20_s13 = sshll.u32 %s135_s12, 4  ;;  %s30_s15 = sshll.u32 %s136_s14, 4  ;;  %s21_s13 = int_to_ptr.vmem [resolvable:$true] %s20_s13  ;;  %s31_s15 = int_to_ptr.vmem [resolvable:$true] %s30_s15 }
   0x4   :  { %s77_s16 = scalar_lea.vmem %s21_s13, 128  ;;  %p82_p1 = scmp.lt.s32.totalorder %s21_s13, %s21_s13 }
   0x5   :  { %p78_p0 = scmp.ne.s32.totalorder %s21_s13, %s77_s16  ;;  %p83_p2 = scmp.lt.s32.totalorder %s77_s16, %s77_s16 }
   0x7   :  { %p84_p3 = por %p83_p2, %p82_p1 }
   0x9   :  { %p85_p4 = pnand %p84_p3, %p78_p0 }
   0xb   :  { %88 = shalt.err (!%p85_p4)
}
   0xc   :  { %23 = dma.hbm_to_vmem [thread:$0]  %s171_s1, 128, %s21_s13, [#allocation4]  }
   0xd   :  { %s97_s19 = scalar_lea.vmem %s31_s15, 128  ;;  %p102_p6 = scmp.lt.s32.totalorder %s31_s15, %s31_s15 }
   0xe   :  { %p98_p5 = scmp.ne.s32.totalorder %s31_s15, %s97_s19  ;;  %p103_p7 = scmp.lt.s32.totalorder %s97_s19, %s97_s19 }
  0x10   :  { %p104_p8 = por %p103_p7, %p102_p6 }
  0x12   :  { %p105_p9 = pnand %p104_p8, %p98_p5 }
  0x14   :  { %108 = shalt.err (!%p105_p9)
}
  0x15   :  { %33 = dma.hbm_to_vmem [thread:$0]  %s172_s2, 128, %s31_s15, [#allocation7]  }
  0x16   :  { %129 = dma.done.wait [#allocation4], 128  }
  0x17   :  { %130 = vsyncadd [#allocation4], 4294967168 }
  0x18   :  { %131 = dma.done.wait [#allocation7], 128  }
  0x19   :  { %132 = vsyncadd [#allocation7], 4294967168  ;;  %v45_v0 = vstv %s170_s0  ;;  %v40_v1 = vld [vmem:[#allocation3] sm:$0xff]  ;;  %v41_v2 = vld [vmem:[#allocation6] sm:$0xff]  ;;  %s137_s1 = smov [#allocation8]  }
  0x1a   :  { %v44_v3 = vsub.f32 1.0, %v40_v1  ;;  %v46_v4 = vsub.f32 %v40_v1, %v45_v0  ;;  %s56_s24 = sshll.u32 %s137_s1, 4  ;;  %vm43_vm0 = vcmp.eq.s32.totalorder %v41_v2, 1  ;;  %s57_s24 = int_to_ptr.vmem [resolvable:$true] %s56_s24 }
  0x1b   :  { %s109_s2 = scalar_lea.vmem %s57_s24, 128  ;;  %p114_p11 = scmp.lt.s32.totalorder %s57_s24, %s57_s24 }
  0x1c   :  { %v47_v5 = vmax.f32 %v46_v4, 0.0  ;;  %p110_p10 = scmp.ne.s32.totalorder %s57_s24, %s109_s2  ;;  %p115_p12 = scmp.lt.s32.totalorder %s109_s2, %s109_s2 }
  0x1e   :  { %v48_v6 = vsel %vm43_vm0, %v44_v3, %v47_v5  ;;  %p116_p13 = por %p115_p12, %p114_p11 }
  0x1f   :  { %49 = vst [vmem:[#allocation8] sm:$0xff] %v48_v6 }
  0x20   :  { %p117_p0 = pnand %p116_p13, %p110_p10 }
  0x22   :  { %120 = shalt.err (!%p117_p0)
}
  0x23   :  { %59 = dma.vmem_to_hbm [thread:$0]  %s57_s24, 128, %s173_s3, [#allocation5]  }
  0x24   :  { %133 = dma.done.wait [#allocation5], 128  }
  0x25   :  { %134 = vsyncadd [#allocation5], 4294967168 }
  0x26   :  { %63 = vsyncpa [#allocation4], 1 }
  0x27   :  { %64 = vsyncpa [#allocation7], 1 }
  0x28   :  { %65 = vsyncpa [#allocation5], 1 }

</bundles_post_ra>
